<compile_context>
chip_gen: v7x
topology: tpu7x:2x2x1
jax: 0.10.0
libtpu: 0.0.40
codegen_flags: <defaults>
</compile_context>

<pallas_src>
import functools

import jax
import jax.numpy as jnp
from jax.experimental import pallas as pl
from jax.experimental.pallas import tpu as pltpu


_LANE = 128
_MAX_HW_TILE = 2048   # lanes per HW tile (upper bound; budget may shrink it)
_VPU_MAX_CIN = 4      # <= this many input channels: unrolled VPU FMA; else MXU einsum


def _round_up(x, m):
    return ((x + m - 1) // m) * m


def _vmem_capacity_bytes():
    """Physical VMEM of this generation; conservative fallback if query fails."""
    try:
        info = pltpu.get_tpu_info()
        cap = getattr(info, "vmem_capacity_bytes", None)
        if cap:
            return int(cap)
    except Exception:
        pass
    return 64 << 20  # v7x per-TensorCore size — safe everywhere


def _targetfc_kernel(x_ref, wb_ref, o_ref, *, c_in, use_vpu):
    # x_ref : (Bt, C_in, T)           input tile (input dtype)
    # wb_ref: (Bt, C_out, C_in + 1)   f32 per-sample weights, bias as last column
    # o_ref : (Bt, C_out, T)
    x = x_ref[...]
    wb = wb_ref[...]
    w = wb[:, :, :c_in]                      # (Bt, C_out, C_in), f32
    bias = wb[:, :, c_in:]                   # (Bt, C_out, 1),   f32

    if use_vpu:
        # Tiny contraction: unrolled broadcast FMA on the VPU. Cast hoisted out of
        # the loop; single bias broadcast initializes the accumulator.
        xf = x.astype(jnp.float32)
        acc = jnp.broadcast_to(bias, o_ref.shape)
        for i in range(c_in):
            acc = acc + w[:, :, i:i + 1] * xf[:, i:i + 1, :]
    else:
        # Otherwise-idle MXU: weights stationary, lane-dense T streamed.
        acc = jnp.einsum("boi,bis->bos", w, x.astype(jnp.float32),
                         preferred_element_type=jnp.float32) + bias

    o_ref[...] = acc.astype(o_ref.dtype)


def target_fc(x, weight, bias):
    """x: (B, C_in, H, W); weight: (B, C_out, C_in, 1, 1); bias: (B, C_out)."""
    B, C_in, H, W = x.shape
    C_out = weight.shape[1]
    HW = H * W

    x2 = x.reshape(B, C_in, HW)
    # Fold the bias into an f32 weight block (tiny, VMEM-resident across the t axis);
    # keeping it f32 avoids rounding the bias when inputs/weights are bf16.
    w2 = weight.reshape(B, C_out, C_in).astype(jnp.float32)
    wb = jnp.concatenate([w2, bias.reshape(B, C_out, 1).astype(jnp.float32)], axis=2)

    dtype_bytes = jnp.dtype(x.dtype).itemsize
    sub = max(8, (8 * 4) // dtype_bytes)          # sublane padding unit for this dtype
    cin_pad = _round_up(C_in, sub)
    cout_pad = _round_up(C_out, sub)

    # ---- generation-aware VMEM budget -------------------------------------------
    vmem_cap = _vmem_capacity_bytes()             # 128 MiB v5e/v6e, 64 MiB v7x
    total_budget = min(vmem_cap // 2, 48 << 20)   # live, double-buffered tiles
    step_budget = total_budget // 2               # single copy of x + out tiles

    # ---- spatial tile: lane-dense multiple of 128 (or full HW when tiny) ---------
    if HW <= _LANE:
        T = HW
    else:
        T = min(_MAX_HW_TILE, (HW // _LANE) * _LANE)

    # ---- batch tile: as many samples per step as the budget allows ---------------
    per_sample = (cin_pad + cout_pad) * T * dtype_bytes
    Bt = max(1, min(B, step_budget // max(per_sample, 1)))

    grid_b = pl.cdiv(B, Bt)
    grid_t = pl.cdiv(HW, T)

    # Keep >=2 grid steps so v7x's two TensorCores both get work (prefer splitting
    # the spatial axis; weights are tiny so residency loss is negligible).
    if grid_b * grid_t < 2:
        if HW > _LANE:
            T = _round_up(pl.cdiv(HW, 2), _LANE)
            grid_t = pl.cdiv(HW, T)
        elif B > 1:
            Bt = pl.cdiv(B, 2)
            grid_b = pl.cdiv(B, Bt)

    use_vpu = C_in <= _VPU_MAX_CIN
    kernel = functools.partial(_targetfc_kernel, c_in=C_in, use_vpu=use_vpu)

    # Explicit scoped-VMEM limit sized to the actual double-buffered blocks
    # (v5e's default scoped limit is only 16 MiB; v7x physical is only 64 MiB).
    x_blk = Bt * cin_pad * T * dtype_bytes
    o_blk = Bt * cout_pad * T * dtype_bytes
    wb_blk = Bt * cout_pad * _round_up(C_in + 1, _LANE) * 4
    vmem_limit = int(min(vmem_cap,
                         max(2 * (x_blk + o_blk + wb_blk) + (8 << 20), 32 << 20)))

    cost = pl.CostEstimate(
        flops=2 * B * C_out * C_in * HW,
        transcendentals=0,
        bytes_accessed=dtype_bytes * (B * C_in * HW + B * C_out * HW)
                       + 4 * B * C_out * (C_in + 1),
    )

    out = pl.pallas_call(
        kernel,
        out_shape=jax.ShapeDtypeStruct((B, C_out, HW), x.dtype),
        grid_spec=pltpu.PrefetchScalarGridSpec(
            num_scalar_prefetch=0,
            grid=(grid_b, grid_t),
            in_specs=[
                # x tile: batch/spatial blocked; lane-dense last dim (mult of 128 or full)
                pl.BlockSpec((Bt, C_in, T), lambda b, t: (b, 0, t)),
                # weights+bias: constant block index along t -> resident, no re-DMA
                pl.BlockSpec((Bt, C_out, C_in + 1), lambda b, t: (b, 0, 0)),
            ],
            out_specs=pl.BlockSpec((Bt, C_out, T), lambda b, t: (b, 0, t)),
        ),
        compiler_params=pltpu.CompilerParams(
            dimension_semantics=("parallel", "parallel"),
            vmem_limit_bytes=vmem_limit),
        cost_estimate=cost,
    )(x2, wb)

    return out.reshape(B, C_out, H, W)


if __name__ == "__main__":
    # Small shapes consistent with the module's forward.
    B, C_in, C_out, H, W = 2, 4, 8, 16, 16

    key = jax.random.PRNGKey(0)
    kx, kw, kb = jax.random.split(key, 3)
    x = jax.random.normal(kx, (B, C_in, H, W), dtype=jnp.float32)
    weight = jax.random.normal(kw, (B, C_out, C_in, 1, 1), dtype=jnp.float32) * 0.1
    bias = jax.random.normal(kb, (B, C_out), dtype=jnp.float32) * 0.1

    out = target_fc(x, weight, bias)
    out = jax.block_until_ready(out)

    # Pure-JAX reference (same semantics as the grouped 1x1 conv).
    ref = jnp.einsum("boi,bihw->bohw", weight.reshape(B, C_out, C_in), x) \
          + bias[:, :, None, None]

    assert out.shape == (B, C_out, H, W)
    assert jnp.allclose(out, ref, atol=1e-5, rtol=1e-5)
    print("KERNEL_OK")
</pallas_src>

<mosaic_0001>
module attributes {stable_mosaic.version = 11 : i64} {
  func.func @_targetfc_kernel(%arg0: i32, %arg1: i32, %arg2: memref<2x4x128xf32, #tpu.memory_space<vmem>>, %arg3: memref<2x8x5xf32, #tpu.memory_space<vmem>>, %arg4: memref<2x8x128xf32, #tpu.memory_space<vmem>>) attributes {dimension_semantics = [#tpu.dimension_semantics<parallel>, #tpu.dimension_semantics<parallel>], iteration_bounds = array<i64: 1, 2>, scalar_prefetch = 0 : i64, scratch_operands = 0 : i64, tpu.core_type = #tpu.core_type<tc>, window_params = [{transform_indices = @transform_0, window_bounds = array<i64: 2, 4, 128>}, {transform_indices = @transform_1, window_bounds = array<i64: 2, 8, 5>}, {transform_indices = @transform_2, window_bounds = array<i64: 2, 8, 128>}]} {
    %c0 = arith.constant 0 : index
    %c0_0 = arith.constant 0 : index
    %c0_1 = arith.constant 0 : index
    %0 = vector.load %arg2[%c0, %c0_0, %c0_1] : memref<2x4x128xf32, #tpu.memory_space<vmem>>, vector<2x4x128xf32>
    %c0_2 = arith.constant 0 : index
    %c0_3 = arith.constant 0 : index
    %c0_4 = arith.constant 0 : index
    %1 = vector.load %arg3[%c0_2, %c0_3, %c0_4] : memref<2x8x5xf32, #tpu.memory_space<vmem>>, vector<2x8x5xf32>
    %2 = vector.extract_strided_slice %1 {offsets = [0, 0, 0], sizes = [2, 8, 4], strides = [1, 1, 1]} : vector<2x8x5xf32> to vector<2x8x4xf32>
    %3 = vector.extract_strided_slice %1 {offsets = [0, 0, 4], sizes = [2, 8, 1], strides = [1, 1, 1]} : vector<2x8x5xf32> to vector<2x8x1xf32>
    %4 = vector.shape_cast %3 : vector<2x8x1xf32> to vector<2x8x1xf32>
    %5 = vector.broadcast %4 : vector<2x8x1xf32> to vector<2x8x128xf32>
    %6 = vector.extract_strided_slice %2 {offsets = [0, 0, 0], sizes = [2, 8, 1], strides = [1, 1, 1]} : vector<2x8x4xf32> to vector<2x8x1xf32>
    %7 = vector.extract_strided_slice %0 {offsets = [0, 0, 0], sizes = [2, 1, 128], strides = [1, 1, 1]} : vector<2x4x128xf32> to vector<2x1x128xf32>
    %8 = vector.broadcast %6 : vector<2x8x1xf32> to vector<2x8x128xf32>
    %9 = vector.broadcast %7 : vector<2x1x128xf32> to vector<2x8x128xf32>
    %10 = arith.mulf %8, %9 : vector<2x8x128xf32>
    %11 = arith.addf %5, %10 : vector<2x8x128xf32>
    %12 = vector.extract_strided_slice %2 {offsets = [0, 0, 1], sizes = [2, 8, 1], strides = [1, 1, 1]} : vector<2x8x4xf32> to vector<2x8x1xf32>
    %13 = vector.extract_strided_slice %0 {offsets = [0, 1, 0], sizes = [2, 1, 128], strides = [1, 1, 1]} : vector<2x4x128xf32> to vector<2x1x128xf32>
    %14 = vector.broadcast %12 : vector<2x8x1xf32> to vector<2x8x128xf32>
    %15 = vector.broadcast %13 : vector<2x1x128xf32> to vector<2x8x128xf32>
    %16 = arith.mulf %14, %15 : vector<2x8x128xf32>
    %17 = arith.addf %11, %16 : vector<2x8x128xf32>
    %18 = vector.extract_strided_slice %2 {offsets = [0, 0, 2], sizes = [2, 8, 1], strides = [1, 1, 1]} : vector<2x8x4xf32> to vector<2x8x1xf32>
    %19 = vector.extract_strided_slice %0 {offsets = [0, 2, 0], sizes = [2, 1, 128], strides = [1, 1, 1]} : vector<2x4x128xf32> to vector<2x1x128xf32>
    %20 = vector.broadcast %18 : vector<2x8x1xf32> to vector<2x8x128xf32>
    %21 = vector.broadcast %19 : vector<2x1x128xf32> to vector<2x8x128xf32>
    %22 = arith.mulf %20, %21 : vector<2x8x128xf32>
    %23 = arith.addf %17, %22 : vector<2x8x128xf32>
    %24 = vector.extract_strided_slice %2 {offsets = [0, 0, 3], sizes = [2, 8, 1], strides = [1, 1, 1]} : vector<2x8x4xf32> to vector<2x8x1xf32>
    %25 = vector.extract_strided_slice %0 {offsets = [0, 3, 0], sizes = [2, 1, 128], strides = [1, 1, 1]} : vector<2x4x128xf32> to vector<2x1x128xf32>
    %26 = vector.broadcast %24 : vector<2x8x1xf32> to vector<2x8x128xf32>
    %27 = vector.broadcast %25 : vector<2x1x128xf32> to vector<2x8x128xf32>
    %28 = arith.mulf %26, %27 : vector<2x8x128xf32>
    %29 = arith.addf %23, %28 : vector<2x8x128xf32>
    %c0_5 = arith.constant 0 : index
    %c0_6 = arith.constant 0 : index
    %c0_7 = arith.constant 0 : index
    %30 = vector.load %arg4[%c0_5, %c0_6, %c0_7] : memref<2x8x128xf32, #tpu.memory_space<vmem>>, vector<2x8x128xf32>
    tpu.vector_store %arg4[%c0_5, %c0_6, %c0_7], %29 {strides = array<i32>} : memref<2x8x128xf32, #tpu.memory_space<vmem>>, vector<2x8x128xf32>,
    return
  }
  func.func @transform_0(%arg0: i32, %arg1: i32) -> (i32, i32, i32) {
    %c0_i32 = arith.constant 0 : i32
    %c0_i32_0 = arith.constant 0 : i32
    return %arg0, %c0_i32, %arg1 : i32, i32, i32
  }
  func.func @transform_1(%arg0: i32, %arg1: i32) -> (i32, i32, i32) {
    %c0_i32 = arith.constant 0 : i32
    %c0_i32_0 = arith.constant 0 : i32
    %c0_i32_1 = arith.constant 0 : i32
    return %arg0, %c0_i32, %c0_i32_0 : i32, i32, i32
  }
  func.func @transform_2(%arg0: i32, %arg1: i32) -> (i32, i32, i32) {
    %c0_i32 = arith.constant 0 : i32
    %c0_i32_0 = arith.constant 0 : i32
    return %arg0, %c0_i32, %arg1 : i32, i32, i32
  }
}

</mosaic_0001>

<bundles_post_ra>
// kernel: tpu_custom_call.1
= control target key start
LH: loop header
LB: loop body
LE: loop exit
PB: predicated region body
PF: predicated region fallthrough
CT: control target
= control target key end

     0   :  { %7 = vsyncpa [#allocation4], 0  ;;  %s756_s0 = inlined_call_operand.vmem [shape: f32[2,4,256], index: 0, kind: input, shape index: {}]   ;;  %s757_s1 = inlined_call_operand.vmem [shape: f32[2,8,5], index: 1, kind: input, shape index: {}]   ;;  %s758_s2 = inlined_call_operand.hbm [shape: f32[2,8,256], index: 2, kind: output, shape index: {}]  }
   0x1   :  { %9 = vsyncpa [#allocation4 + $0x1], 0  ;;  %s626_s9 = smov 0   ;;  %s628_s10 = smov 0  }
   0x2   :  { %s630_s11 = smov 0   ;;  %s632_s12 = smov 0  }
   0x3   :  { %s634_s13 = smov 0   ;;  %s636_s14 = smov 0  }
   0x4 LB: > { %s437_s15 = sadd.s32 4294967295, %s600_s14   ;;  %s438_s16 = sadd.s32 4294967294, %s600_s14   ;;  %s600_s14 = sphi %s636_s14, %s15_s14   ;;  %s596_s13 = sphi %s634_s13, %s765_s13   ;;  %s592_s12 = sphi %s632_s12, %s764_s12   ;;  %s588_s11 = sphi %s630_s11, %s763_s11   ;;  %s584_s10 = sphi %s628_s10, %s762_s10   ;;  %s580_s9 = sphi %s626_s9, %s761_s9  }
   0x5   : > { %s24_s17 = sadd.s32 1, %s596_s13  ;;  %s36_s18 = sadd.s32 1, %s588_s11 }
   0x6   : > { %p25_p0 = scmp.ge.s32.totalorder %s24_s17, 2  ;;  %p43_p1 = scmp.ne.s32.totalorder %s588_s11, %s584_s10 }
   0x7   : > { %p44_p2 = scmp.eq.s32.totalorder %s600_s14, 0  ;;  %p101_p3 = scmp.eq.s32.totalorder %s437_s15, 1 }
   0x8   : > { %s767_s17 = smov (%p25_p0, %s24_s17), 0  ;;  %p106_p6 = scmp.ne.s32.totalorder %s584_s10, %s580_s9 }
   0x9   : > { %p45_p4 = por %p44_p2, %p43_p1  ;;  %p665_p5 = por %p101_p3, %p43_p1 }
   0xa   : > { %s32_s20 = ssub.s32 %s596_s13, %s767_s17  ;;  %p107_p8 = scmp.eq.s32.totalorder %s438_s16, 1 }
   0xb   : > { %p34_p7 = scmp.eq.s32.totalorder %s32_s20, 0  ;;  %p441_p10 = scmp.ge.s32.totalorder %s600_s14, 2 }
   0xc   : > { %p676_p9 = por %p107_p8, %p106_p6 }
   0xd   : > { %s674_s21 = scalar_select %p34_p7, %s588_s11, %s36_s18  }
   0xe   : > { %132 = sbr.rel (%p441_p10) target bundleno = 28 (0x1c), region = 20 }
  0x15   : > { %135 = sbr.rel (!%p45_p4) target bundleno = 28 (0x1c), region = 24  ;;  %s137_s23 = sand.u32 (%p45_p4), 1, %s588_s11  }
  0x16   : > { %s443_s24 = sshll.u32 (%p45_p4), %s596_s13, 2  ;;  %s442_s25 = sshll.u32 (%p45_p4), %s137_s23, 3 }
  0x17   : > { %s144_s28 = scalar_lea.vmem (%p45_p4), %s756_s0, %s443_s24  ;;  %s139_s29 = scalar_lea.vmem (%p45_p4), [#allocation2], %s442_s25 }
  0x18   : > { %v160_v0 = vld [vmem:[%s144_s28] sm:$0xf] (%p45_p4)  ;;  %v162_v1 = vld [vmem:[%s144_s28 + $0x8] sm:$0xf] (%p45_p4) }
  0x19   : > { %161 = vst [vmem:[%s139_s29] sm:$0xf] (%p45_p4), %v160_v0  ;;  %163 = vst [vmem:[%s139_s29 + $0x4] sm:$0xf] (%p45_p4), %v162_v1 }
  0x1c PF: > { %p444_p11 = scmp.ge.s32.totalorder %s600_s14, 1  ;;  %p189_p12 = scmp.lt.s32.totalorder %s600_s14, 3 }
  0x1e   : > { %p190_p13 = pnand %p444_p11, %p189_p12 }
  0x1f   : > { %v232_v2 = vld [vmem:[%s757_s1] sm:$0xff] (!%p190_p13)  ;;  %v602_v3 = vmov (!%p190_p13), 0   ;;  %v603_v4 = vmov (!%p190_p13), 4   ;;  %v233_v5 = vld [vmem:[%s757_s1 + $0x8] sm:$0xff] (!%p190_p13)  ;;  %v604_v6 = vmov (!%p190_p13), 1   ;;  %v605_v7 = vmov (!%p190_p13), 2  }
  0x20   : > { %193 = sbr.rel (%p190_p13) target bundleno = 204 (0xcc), region = 65  ;;  %514 = vset.pattern.permute.xlu0 (!%p190_p13), %v602_v3  ;;  %515 = vset.pattern.permute.xlu1 (!%p190_p13), %v603_v4  ;;  %v606_v8 = vmov (!%p190_p13), 3   ;;  %v252_v9 = vlaneseq (!%p190_p13)  ;;  %s697_s6 = sand.u32 (!%p190_p13), 1, %s584_s10  }
  0x21   : > { %236 = vperm.xlu1 (!%p190_p13), %515, %v232_v2   ;;  %245 = vperm.xlu0 (!%p190_p13), %514, %v232_v2   ;;  %s445_s7 = sshll.u32 (!%p190_p13), %s697_s6, 3  ;;  %s446_s15 = sshll.u32 (!%p190_p13), %s697_s6, 4 }
  0x22   : > { %v253_v11 = vshrl.u32 (!%p190_p13), %v252_v9, 7  ;;  %s198_s8 = scalar_lea.vmem (!%p190_p13), [#allocation2], %s445_s7  ;;  %s221_s16 = scalar_lea.vmem (!%p190_p13), [#allocation3], %s446_s15 }
  0x23   : > { %v230_v15 = vld [vmem:[%s198_s8] sm:$0xf] (!%p190_p13)  ;;  %v231_v20 = vld [vmem:[%s198_s8 + $0x4] sm:$0xf] (!%p190_p13)  ;;  %s342_s18 = sshll.u32 (!%p190_p13), %s221_s16, 4  ;;  %s448_s20 = sshll.u32 (!%p190_p13), %s592_s12, 7  ;;  %s702_s18 = int_to_ptr.vmem [resolvable:$true] %s342_s18 }
  0x24   : > { %v254_v13 = vsub.s32 (!%p190_p13), 0, %v253_v11  ;;  %v274_v17 = vsub.s32 (!%p190_p13), 1, %v253_v11  ;;  %v294_v19 = vsub.s32 (!%p190_p13), 2, %v253_v11  ;;  %v314_v27 = vsub.s32 (!%p190_p13), 3, %v253_v11  ;;  %s707_s25 = scalar_lea.hbm (!%p190_p13), %s758_s2, %s448_s20  ;;  %s327_s26 = scalar_lea.sflag (!%p190_p13), [#allocation4], %s697_s6 }
  0x25   : > { %241 = vperm.xlu1 (!%p190_p13), %515, %v233_v5   ;;  %249 = vperm.xlu0 (!%p190_p13), %514, %v233_v5   ;;  %s522_s27 = scalar_lea.vmem (!%p190_p13), %s702_s18, 256  ;;  %s607_s12 = smov (!%p190_p13), [#allocation3]  }
  0x26   : > { %v255_v18 = vrot.slane (!%p190_p13), %v230_v15, %v254_v13  ;;  %v275_v22 = vrot.slane (!%p190_p13), %v230_v15, %v274_v17  ;;  %v259_v25 = vrot.slane (!%p190_p13), %v231_v20, %v254_v13  ;;  %v295_v26 = vrot.slane (!%p190_p13), %v230_v15, %v294_v19  ;;  %p523_p0 = scmp.ne.s32.totalorder (!%p190_p13), %s702_s18, %s522_s27  ;;  %s526_s28 = sshll.u32 (!%p190_p13), %s607_s12, 4  ;;  %s527_s28 = int_to_ptr.vmem [resolvable:$false] %s526_s28 }
  0x27   : > { %v279_v28 = vrot.slane %v231_v20, %v274_v17  ;;  %v299_v31 = vrot.slane %v231_v20, %v294_v19  ;;  %v315_v35 = vrot.slane %v230_v15, %v314_v27  ;;  %v319_v40 = vrot.slane %v231_v20, %v314_v27  ;;  %s528_s29 = scalar_lea.vmem %s527_s28, 512  ;;  %p529_p3 = scmp.lt.s32.totalorder %s702_s18, %s527_s28 }
  0x28   : > { %p524_p1 = pnand %p523_p0, %p665_p5  ;;  %p530_p4 = scmp.lt.s32.totalorder %s528_s29, %s522_s27 }
  0x29   : > { %517 = vset.pattern.permute.xlu1 %v604_v6  ;;  %516 = vset.pattern.permute.xlu0 %v604_v6 }
  0x2a   : > { %269 = vperm.xlu1 %517, %v233_v5   ;;  %265 = vperm.xlu0 %516, %v232_v2   ;;  %p525_p2 = pneg %p524_p1  ;;  %p531_p6 = por %p530_p4, %p529_p3 }
  0x2c   : > { %p532_p7 = pnand %p531_p6, %p525_p2 }
  0x2e   : > { %518 = vset.pattern.permute.xlu1 %v605_v7  ;;  %519 = vset.pattern.permute.xlu0 %v605_v7 }
  0x2f   : > { %285 = vperm.xlu1 %518, %v232_v2   ;;  %289 = vperm.xlu0 %519, %v233_v5  }
  0x33   : > { %520 = vset.pattern.permute.xlu1 %v606_v8  ;;  %521 = vset.pattern.permute.xlu0 %v606_v8 }
  0x34   : > { %305 = vperm.xlu1 %520, %v232_v2  }
  0x38   : > { %309 = vperm.xlu1 %520, %v233_v5  }
  0xa0   : > { %v237_v10 = vpop.permute.xlu1 %236  ;;  %v246_v12 = vpop.permute.xlu0 %245 }
  0xa1   : > { %v260_v24 = vmul.f32 %v255_v18, %v246_v12 }
  0xa3   : > { %v262_v32 = vadd.f32 %v260_v24, %v237_v10 }
  0xa4   : > { %v242_v14 = vpop.permute.xlu1 %241  ;;  %v250_v16 = vpop.permute.xlu0 %249 }
  0xa5   : > { %v261_v33 = vmul.f32 %v259_v25, %v250_v16 }
  0xa7   : > { %v263_v41 = vadd.f32 %v261_v33, %v242_v14 }
  0xa9   : > { %v270_v21 = vpop.permute.xlu1 %269  ;;  %v266_v23 = vpop.permute.xlu0 %265 }
  0xaa   : > { %v280_v29 = vmul.f32 %v275_v22, %v266_v23  ;;  %v281_v37 = vmul.f32 %v279_v28, %v270_v21 }
  0xac   : > { %v282_v38 = vadd.f32 %v280_v29, %v262_v32  ;;  %v283_v45 = vadd.f32 %v281_v37, %v263_v41 }
  0xae   : > { %v286_v30 = vpop.permute.xlu1 %285  ;;  %v290_v36 = vpop.permute.xlu0 %289 }
  0xaf   : > { %v300_v34 = vmul.f32 %v295_v26, %v286_v30  ;;  %v301_v43 = vmul.f32 %v299_v31, %v290_v36 }
  0xb1   : > { %v302_v42 = vadd.f32 %v300_v34, %v282_v38  ;;  %v303_v48 = vadd.f32 %v301_v43, %v283_v45 }
  0xb3   : > { %v306_v39 = vpop.permute.xlu1 %305 }
  0xb4   : > { %v320_v44 = vmul.f32 %v315_v35, %v306_v39 }
  0xb6   : > { %v322_v46 = vadd.f32 %v320_v44, %v302_v42 }
  0xb7   : > { %v310_v47 = vpop.permute.xlu1 %309 }
  0xb8   : > { %324 = vst [vmem:[%s221_s16] sm:$0xff] %v322_v46  ;;  %v321_v49 = vmul.f32 %v319_v40, %v310_v47 }
  0xba   : > { %v323_v50 = vadd.f32 %v321_v49, %v303_v48 }
  0xbc   : > { %325 = vst [vmem:[%s221_s16 + $0x8] sm:$0xff] %v323_v50 }
  0xbd   : > { %535 = shalt.err (!%p532_p7)
}
  0xbe   : > { %s536_s30 = scalar_lea.hbm %s707_s25, 256  ;;  %s540_s5 = scalar_lea.hbm %s758_s2, 512 }
  0xbf   : > { %p537_p8 = scmp.ne.s32.totalorder %s707_s25, %s536_s30  ;;  %p541_p13 = scmp.lt.u32.totalorder %s707_s25, %s758_s2 }
  0xc0   : > { %p542_p0 = scmp.lt.u32.totalorder %s540_s5, %s536_s30  ;;  %p544_p2 = scmp.lt.u32.totalorder %s536_s30, %s707_s25 }
  0xc1   : > { %p538_p11 = pnand %p537_p8, %p665_p5 }
  0xc2   : > { %p543_p1 = por %p542_p0, %p541_p13 }
  0xc3   : > { %p539_p12 = pneg %p538_p11 }
  0xc4   : > { %p545_p3 = por %p544_p2, %p543_p1 }
  0xc6   : > { %p546_p4 = pnand %p545_p3, %p539_p12 }
  0xc8   : > { %549 = shalt.err (!%p546_p4)
}
  0xc9   : > { %s608_s15 = smov 128   ;;  %s609_s16 = smov 256  }
  0xca   : > { %s610_s20 = smov 8  }
  0xcb   : > { %451 = dma.vmem_to_hbm [thread:$0]  (%p665_p5), %s702_s18, 256, %s707_s25, %s327_s26, %s608_s15, %s609_s16, %s610_s20  }
  0xcc PF: > { %s357_s23 = sand.u32 1, %s580_s9   ;;  %p454_p6 = pnand %p441_p10, %p676_p9 }
  0xcd   : > { %s358_s24 = scalar_lea.sflag [#allocation4], %s357_s23 }
  0xce   : > { %575 = dma.done.wait (!%p454_p6), %s358_s24, 256  }
  0xcf   : > { %577 = vsyncadd (!%p454_p6), %s358_s24, 4294967040  ;;  %s15_s14 = sadd.s32 1, %s600_s14   ;;  %s761_s9 = smov %s584_s10 }
  0xd0   : > { %p12_p7 = scmp.ge.s32.totalorder %s15_s14, 4   ;;  %s762_s10 = smov %s588_s11 }
  0xd1   : > { %s763_s11 = smov %s674_s21  ;;  %s764_s12 = smov %s596_s13 }
  0xd2   : > { %s765_s13 = smov %s767_s17  ;;  %14 = sbr.rel (!%p12_p7) target bundleno = 4 (0x4), region = 112 }
  0xd9   :  { %363 = vsyncpa [#allocation4], 1 }
  0xda   :  { %365 = vsyncpa [#allocation4 + $0x1], 1 }

</bundles_post_ra>
